<compile_context>
chip_gen: v6e
topology: v6e:2x2x1
jax: 0.10.0
libtpu: 0.0.40
codegen_flags: <defaults>
</compile_context>

<pallas_src>
import functools

import jax
import jax.numpy as jnp
from jax import lax
from jax.experimental import pallas as pl
from jax.experimental.pallas import tpu as pltpu

_EPS = 1e-12  # matches torch.nn.functional.normalize default eps


def _round_up(x, m):
    return ((x + m - 1) // m) * m


def _l2_normalize_f32(x):
    # x / max(||x||, eps)  ==  x * rsqrt(max(||x||^2, eps^2))  (rsqrt -> EUP slot)
    ssq = jnp.sum(x * x, axis=-1, keepdims=True)
    return x * lax.rsqrt(jnp.maximum(ssq, _EPS * _EPS))


# ---------------------------------------------------------------------------
# unpaired negatives:  logits_i = [ <q_i,p_i>,  q_i . n_k ] / T,  label = 0
# ---------------------------------------------------------------------------
def _infonce_neg_kernel(q_ref, p_ref, n_ref, out_ref,
                        q_s, m_s, l_s, pos_s,
                        *, inv_t, num_neg, tile_m, dot_dtype):
    j = pl.program_id(1)

    @pl.when(j == 0)
    def _init():
        # normalize once per N tile; fold 1/temperature into q
        q = _l2_normalize_f32(q_ref[...].astype(jnp.float32)) * inv_t
        p = _l2_normalize_f32(p_ref[...].astype(jnp.float32))
        pos = jnp.sum(q * p, axis=-1, keepdims=True)        # already scaled by 1/T
        q_s[...] = q.astype(q_s.dtype)
        pos_s[...] = pos
        m_s[...] = pos            # running max initialized with the positive logit
        l_s[...] = jnp.ones_like(l_s)   # exp(pos - pos) = 1

    n = _l2_normalize_f32(n_ref[...].astype(jnp.float32))
    # NT contraction over the lane axis D -- no explicit transpose
    s = lax.dot_general(q_s[...], n.astype(dot_dtype),
                        dimension_numbers=(((1,), (1,)), ((), ())),
                        preferred_element_type=jnp.float32)  # (tile_n, tile_m)
    col = lax.broadcasted_iota(jnp.int32, s.shape, 1) + j * tile_m
    s = jnp.where(col < num_neg, s, -jnp.inf)                # mask padded negatives

    m_prev = m_s[...]
    m_new = jnp.maximum(m_prev, jnp.max(s, axis=-1, keepdims=True))
    alpha = jnp.exp(m_prev - m_new)
    l_s[...] = alpha * l_s[...] + jnp.sum(jnp.exp(s - m_new), axis=-1, keepdims=True)
    m_s[...] = m_new

    @pl.when(j == pl.num_programs(1) - 1)
    def _finalize():
        out_ref[...] = m_s[...] + jnp.log(l_s[...]) - pos_s[...]


# ---------------------------------------------------------------------------
# no negatives (in-batch):  logits = q @ p^T / T,  label_i = i
# positive logit computed directly as <q_i, p_i> (no diagonal extraction).
# ---------------------------------------------------------------------------
def _infonce_noneg_kernel(q_ref, prow_ref, pcol_ref, out_ref,
                          q_s, m_s, l_s, pos_s,
                          *, inv_t, num_cols, tile_m, dot_dtype):
    j = pl.program_id(1)

    @pl.when(j == 0)
    def _init():
        q = _l2_normalize_f32(q_ref[...].astype(jnp.float32)) * inv_t
        p = _l2_normalize_f32(prow_ref[...].astype(jnp.float32))
        pos_s[...] = jnp.sum(q * p, axis=-1, keepdims=True)  # diagonal logit (scaled)
        q_s[...] = q.astype(q_s.dtype)
        m_s[...] = jnp.full_like(m_s, -jnp.inf)
        l_s[...] = jnp.zeros_like(l_s)

    pc = _l2_normalize_f32(pcol_ref[...].astype(jnp.float32))
    s = lax.dot_general(q_s[...], pc.astype(dot_dtype),
                        dimension_numbers=(((1,), (1,)), ((), ())),
                        preferred_element_type=jnp.float32)  # (tile_n, tile_m)
    col = lax.broadcasted_iota(jnp.int32, s.shape, 1) + j * tile_m
    s = jnp.where(col < num_cols, s, -jnp.inf)               # mask padded columns

    m_prev = m_s[...]
    m_new = jnp.maximum(m_prev, jnp.max(s, axis=-1, keepdims=True))
    alpha = jnp.exp(m_prev - m_new)
    l_s[...] = alpha * l_s[...] + jnp.sum(jnp.exp(s - m_new), axis=-1, keepdims=True)
    m_s[...] = m_new

    @pl.when(j == pl.num_programs(1) - 1)
    def _finalize():
        out_ref[...] = m_s[...] + jnp.log(l_s[...]) - pos_s[...]


# ---------------------------------------------------------------------------
# wrappers
# ---------------------------------------------------------------------------
def _run_streamed(kernel, qp, row_p, col_keys, *, n_pad, tile_n, m_pad, tile_m,
                  d_pad, dot_dtype, itemsize):
    cost = pl.CostEstimate(
        flops=2 * n_pad * m_pad * d_pad + 8 * (2 * n_pad + m_pad) * d_pad,
        transcendentals=n_pad * m_pad + 2 * n_pad + m_pad,
        bytes_accessed=(2 * n_pad + m_pad) * d_pad * itemsize + n_pad * 4,
    )
    return pl.pallas_call(
        kernel,
        out_shape=jax.ShapeDtypeStruct((n_pad, 1), jnp.float32),
        grid_spec=pltpu.PrefetchScalarGridSpec(
            num_scalar_prefetch=0,
            grid=(n_pad // tile_n, m_pad // tile_m),
            in_specs=[
                pl.BlockSpec((tile_n, d_pad), lambda i, j: (i, 0)),
                pl.BlockSpec((tile_n, d_pad), lambda i, j: (i, 0)),
                pl.BlockSpec((tile_m, d_pad), lambda i, j: (j, 0)),
            ],
            out_specs=pl.BlockSpec((tile_n, 1), lambda i, j: (i, 0)),
            scratch_shapes=[
                pltpu.VMEM((tile_n, d_pad), dot_dtype),   # scaled, normalized q
                pltpu.VMEM((tile_n, 1), jnp.float32),     # running max
                pltpu.VMEM((tile_n, 1), jnp.float32),     # running sum
                pltpu.VMEM((tile_n, 1), jnp.float32),     # positive logit
            ],
        ),
        compiler_params=pltpu.CompilerParams(
            dimension_semantics=("parallel", "arbitrary")),
        cost_estimate=cost,
    )(qp, row_p, col_keys)


def _per_row_loss_unpaired(query, positive_key, negative_keys, temperature):
    N, D = query.shape
    M = negative_keys.shape[0]
    inv_t = float(1.0 / temperature)
    dot_dtype = jnp.bfloat16 if query.dtype == jnp.bfloat16 else jnp.float32

    d_pad = _round_up(D, 128)
    tile_n = 128 if N >= 128 else _round_up(N, 8)
    n_pad = _round_up(N, tile_n)
    tile_m = 512 if M >= 512 else _round_up(M, 128)
    m_pad = _round_up(M, tile_m)

    qp = jnp.pad(query, ((0, n_pad - N), (0, d_pad - D)))
    pp = jnp.pad(positive_key, ((0, n_pad - N), (0, d_pad - D)))
    nk = jnp.pad(negative_keys, ((0, m_pad - M), (0, d_pad - D)))

    kernel = functools.partial(_infonce_neg_kernel, inv_t=inv_t, num_neg=M,
                               tile_m=tile_m, dot_dtype=dot_dtype)
    out = _run_streamed(kernel, qp, pp, nk, n_pad=n_pad, tile_n=tile_n,
                        m_pad=m_pad, tile_m=tile_m, d_pad=d_pad,
                        dot_dtype=dot_dtype,
                        itemsize=jnp.dtype(query.dtype).itemsize)
    return out[:N, 0]


def _per_row_loss_in_batch(query, positive_key, temperature):
    N, D = query.shape
    inv_t = float(1.0 / temperature)
    dot_dtype = jnp.bfloat16 if query.dtype == jnp.bfloat16 else jnp.float32

    d_pad = _round_up(D, 128)
    tile_n = 128 if N >= 128 else _round_up(N, 8)
    n_pad = _round_up(N, tile_n)
    tile_m = 512 if N >= 512 else _round_up(N, 128)
    m_pad = _round_up(N, tile_m)

    qp = jnp.pad(query, ((0, n_pad - N), (0, d_pad - D)))
    prow = jnp.pad(positive_key, ((0, n_pad - N), (0, d_pad - D)))
    pcol = jnp.pad(positive_key, ((0, m_pad - N), (0, d_pad - D)))

    kernel = functools.partial(_infonce_noneg_kernel, inv_t=inv_t, num_cols=N,
                               tile_m=tile_m, dot_dtype=dot_dtype)
    out = _run_streamed(kernel, qp, prow, pcol, n_pad=n_pad, tile_n=tile_n,
                        m_pad=m_pad, tile_m=tile_m, d_pad=d_pad,
                        dot_dtype=dot_dtype,
                        itemsize=jnp.dtype(query.dtype).itemsize)
    return out[:N, 0]


def infonce_loss(query, positive_key, negative_keys=None, temperature=0.1,
                 reduction='mean'):
    """InfoNCE forward (negative_mode='unpaired')."""
    # TODO(synk): negative_mode='paired' (3-D negative_keys) not implemented.
    if negative_keys is not None:
        per_row = _per_row_loss_unpaired(query, positive_key, negative_keys,
                                         temperature)
    else:
        per_row = _per_row_loss_in_batch(query, positive_key, temperature)
    if reduction == 'mean':
        return jnp.mean(per_row)
    if reduction == 'sum':
        return jnp.sum(per_row)
    return per_row  # 'none'


# ---------------------------------------------------------------------------
# pure-JAX reference of the PyTorch semantics, for sanity checking
# ---------------------------------------------------------------------------
def _infonce_ref(query, positive_key, negative_keys=None, temperature=0.1):
    def norm(x):
        n = jnp.sqrt(jnp.sum(x * x, axis=-1, keepdims=True))
        return x / jnp.maximum(n, _EPS)

    q = norm(query.astype(jnp.float32))
    p = norm(positive_key.astype(jnp.float32))
    if negative_keys is not None:
        n = norm(negative_keys.astype(jnp.float32))
        pos = jnp.sum(q * p, axis=-1, keepdims=True)
        neg = q @ n.T
        logits = jnp.concatenate([pos, neg], axis=1) / temperature
        labels = jnp.zeros((logits.shape[0],), dtype=jnp.int32)
    else:
        logits = (q @ p.T) / temperature
        labels = jnp.arange(logits.shape[0], dtype=jnp.int32)
    logz = jax.scipy.special.logsumexp(logits, axis=-1)
    picked = jnp.take_along_axis(logits, labels[:, None], axis=-1)[:, 0]
    return jnp.mean(logz - picked)


if __name__ == "__main__":
    key = jax.random.PRNGKey(0)
    k1, k2, k3 = jax.random.split(key, 3)
    N, M, D = 8, 16, 32
    query = jax.random.normal(k1, (N, D), dtype=jnp.float32)
    positive_key = jax.random.normal(k2, (N, D), dtype=jnp.float32)
    negative_keys = jax.random.normal(k3, (M, D), dtype=jnp.float32)

    # unpaired negatives (default InfoNCE usage)
    loss = jax.block_until_ready(infonce_loss(query, positive_key, negative_keys))
    ref = _infonce_ref(query, positive_key, negative_keys)
    assert jnp.allclose(loss, ref, atol=1e-4, rtol=1e-4), (loss, ref)

    # no negatives (in-batch negatives) path
    loss2 = jax.block_until_ready(infonce_loss(query, positive_key, None))
    ref2 = _infonce_ref(query, positive_key, None)
    assert jnp.allclose(loss2, ref2, atol=1e-4, rtol=1e-4), (loss2, ref2)

    print("KERNEL_OK")
</pallas_src>

<mosaic_0001>
module attributes {stable_mosaic.version = 11 : i64} {
  func.func @_infonce_neg_kernel(%arg0: i32, %arg1: i32, %arg2: memref<8x128xf32, #tpu.memory_space<vmem>>, %arg3: memref<8x128xf32, #tpu.memory_space<vmem>>, %arg4: memref<128x128xf32, #tpu.memory_space<vmem>>, %arg5: memref<8x1xf32, #tpu.memory_space<vmem>>, %arg6: memref<8x128xf32, #tpu.memory_space<vmem>>, %arg7: memref<8x1xf32, #tpu.memory_space<vmem>>, %arg8: memref<8x1xf32, #tpu.memory_space<vmem>>, %arg9: memref<8x1xf32, #tpu.memory_space<vmem>>) attributes {dimension_semantics = [#tpu.dimension_semantics<parallel>, #tpu.dimension_semantics<arbitrary>], iteration_bounds = array<i64: 1, 1>, scalar_prefetch = 0 : i64, scratch_operands = 4 : i64, tpu.core_type = #tpu.core_type<tc>, window_params = [{transform_indices = @transform_0, window_bounds = array<i64: 8, 128>}, {transform_indices = @transform_1, window_bounds = array<i64: 8, 128>}, {transform_indices = @transform_2, window_bounds = array<i64: 128, 128>}, {transform_indices = @transform_3, window_bounds = array<i64: 8, 1>}]} {
    %c0_i32 = arith.constant 0 : i32
    %0 = arith.cmpi eq, %arg1, %c0_i32 : i32
    %1 = arith.extui %0 : i1 to i32
    %c0_i32_0 = arith.constant 0 : i32
    %2 = arith.cmpi ne, %1, %c0_i32_0 : i32
    scf.if %2 {
      %c0_19 = arith.constant 0 : index
      %c0_20 = arith.constant 0 : index
      %41 = vector.load %arg2[%c0_19, %c0_20] : memref<8x128xf32, #tpu.memory_space<vmem>>, vector<8x128xf32>
      %42 = arith.mulf %41, %41 : vector<8x128xf32>
      %cst_21 = arith.constant dense<0.000000e+00> : vector<8xf32>
      %43 = vector.multi_reduction <add>, %42, %cst_21 [1] : vector<8x128xf32> to vector<8xf32>
      %44 = vector.shape_cast %43 : vector<8xf32> to vector<8x1xf32>
      %cst_22 = arith.constant 1.000000e-24 : f32
      %45 = vector.broadcast %cst_22 : f32 to vector<8x1xf32>
      %46 = arith.maximumf %44, %45 : vector<8x1xf32>
      %47 = math.rsqrt %46 : vector<8x1xf32>
      %48 = vector.broadcast %47 : vector<8x1xf32> to vector<8x128xf32>
      %49 = arith.mulf %41, %48 : vector<8x128xf32>
      %cst_23 = arith.constant 1.000000e+01 : f32
      %50 = vector.broadcast %cst_23 : f32 to vector<8x128xf32>
      %51 = arith.mulf %49, %50 : vector<8x128xf32>
      %c0_24 = arith.constant 0 : index
      %c0_25 = arith.constant 0 : index
      %52 = vector.load %arg3[%c0_24, %c0_25] : memref<8x128xf32, #tpu.memory_space<vmem>>, vector<8x128xf32>
      %53 = arith.mulf %52, %52 : vector<8x128xf32>
      %cst_26 = arith.constant dense<0.000000e+00> : vector<8xf32>
      %54 = vector.multi_reduction <add>, %53, %cst_26 [1] : vector<8x128xf32> to vector<8xf32>
      %55 = vector.shape_cast %54 : vector<8xf32> to vector<8x1xf32>
      %cst_27 = arith.constant 1.000000e-24 : f32
      %56 = vector.broadcast %cst_27 : f32 to vector<8x1xf32>
      %57 = arith.maximumf %55, %56 : vector<8x1xf32>
      %58 = math.rsqrt %57 : vector<8x1xf32>
      %59 = vector.broadcast %58 : vector<8x1xf32> to vector<8x128xf32>
      %60 = arith.mulf %52, %59 : vector<8x128xf32>
      %61 = arith.mulf %51, %60 : vector<8x128xf32>
      %cst_28 = arith.constant dense<0.000000e+00> : vector<8xf32>
      %62 = vector.multi_reduction <add>, %61, %cst_28 [1] : vector<8x128xf32> to vector<8xf32>
      %63 = vector.shape_cast %62 : vector<8xf32> to vector<8x1xf32>
      %c0_29 = arith.constant 0 : index
      %c0_30 = arith.constant 0 : index
      %64 = vector.load %arg6[%c0_29, %c0_30] : memref<8x128xf32, #tpu.memory_space<vmem>>, vector<8x128xf32>
      tpu.vector_store %arg6[%c0_29, %c0_30], %51 {strides = array<i32>} : memref<8x128xf32, #tpu.memory_space<vmem>>, vector<8x128xf32>,
      %c0_31 = arith.constant 0 : index
      %c0_32 = arith.constant 0 : index
      %65 = vector.load %arg9[%c0_31, %c0_32] : memref<8x1xf32, #tpu.memory_space<vmem>>, vector<8x1xf32>
      tpu.vector_store %arg9[%c0_31, %c0_32], %63 {strides = array<i32>} : memref<8x1xf32, #tpu.memory_space<vmem>>, vector<8x1xf32>,
      %c0_33 = arith.constant 0 : index
      %c0_34 = arith.constant 0 : index
      %66 = vector.load %arg7[%c0_33, %c0_34] : memref<8x1xf32, #tpu.memory_space<vmem>>, vector<8x1xf32>
      tpu.vector_store %arg7[%c0_33, %c0_34], %63 {strides = array<i32>} : memref<8x1xf32, #tpu.memory_space<vmem>>, vector<8x1xf32>,
      %cst_35 = arith.constant 1.000000e+00 : f32
      %67 = vector.broadcast %cst_35 : f32 to vector<8x1xf32>
      %c0_36 = arith.constant 0 : index
      %c0_37 = arith.constant 0 : index
      %68 = vector.load %arg8[%c0_36, %c0_37] : memref<8x1xf32, #tpu.memory_space<vmem>>, vector<8x1xf32>
      tpu.vector_store %arg8[%c0_36, %c0_37], %67 {strides = array<i32>} : memref<8x1xf32, #tpu.memory_space<vmem>>, vector<8x1xf32>,
    } else {
    }
    %c0 = arith.constant 0 : index
    %c0_1 = arith.constant 0 : index
    %3 = vector.load %arg4[%c0, %c0_1] : memref<128x128xf32, #tpu.memory_space<vmem>>, vector<128x128xf32>
    %4 = arith.mulf %3, %3 : vector<128x128xf32>
    %cst = arith.constant dense<0.000000e+00> : vector<128xf32>
    %5 = vector.multi_reduction <add>, %4, %cst [1] : vector<128x128xf32> to vector<128xf32>
    %6 = vector.shape_cast %5 : vector<128xf32> to vector<128x1xf32>
    %cst_2 = arith.constant 1.000000e-24 : f32
    %7 = vector.broadcast %cst_2 : f32 to vector<128x1xf32>
    %8 = arith.maximumf %6, %7 : vector<128x1xf32>
    %9 = math.rsqrt %8 : vector<128x1xf32>
    %10 = vector.broadcast %9 : vector<128x1xf32> to vector<128x128xf32>
    %11 = arith.mulf %3, %10 : vector<128x128xf32>
    %c0_3 = arith.constant 0 : index
    %c0_4 = arith.constant 0 : index
    %12 = vector.load %arg6[%c0_3, %c0_4] : memref<8x128xf32, #tpu.memory_space<vmem>>, vector<8x128xf32>
    %cst_5 = arith.constant dense<0.000000e+00> : vector<8x128xf32>
    %13 = tpu.matmul %12, %11, %cst_5 {dimension_numbers = #tpu.dot_dimension_numbers<[1], [1], [0], [0], [0, 0, 1, 0], [], []>} : vector<8x128xf32>, vector<128x128xf32>, vector<8x128xf32> -> vector<8x128xf32>
    %14 = tpu.iota {dimensions = array<i32: 1>} : vector<8x128xi32>
    %c128_i32 = arith.constant 128 : i32
    %15 = arith.muli %arg1, %c128_i32 : i32
    %16 = vector.broadcast %15 : i32 to vector<8x128xi32>
    %17 = arith.addi %14, %16 : vector<8x128xi32>
    %c16_i32 = arith.constant 16 : i32
    %18 = vector.broadcast %c16_i32 : i32 to vector<8x128xi32>
    %19 = arith.cmpi slt, %17, %18 : vector<8x128xi32>
    %cst_6 = arith.constant 0xFF800000 : f32
    %20 = vector.broadcast %cst_6 : f32 to vector<8x128xf32>
    %21 = arith.select %19, %13, %20 : vector<8x128xi1>, vector<8x128xf32>
    %c0_7 = arith.constant 0 : index
    %c0_8 = arith.constant 0 : index
    %22 = vector.load %arg7[%c0_7, %c0_8] : memref<8x1xf32, #tpu.memory_space<vmem>>, vector<8x1xf32>
    %cst_9 = arith.constant dense<0xFF800000> : vector<8xf32>
    %23 = vector.multi_reduction <maximumf>, %21, %cst_9 [1] : vector<8x128xf32> to vector<8xf32>
    %24 = vector.shape_cast %23 : vector<8xf32> to vector<8x1xf32>
    %25 = arith.maximumf %22, %24 : vector<8x1xf32>
    %26 = arith.subf %22, %25 : vector<8x1xf32>
    %27 = math.exp %26 : vector<8x1xf32>
    %c0_10 = arith.constant 0 : index
    %c0_11 = arith.constant 0 : index
    %28 = vector.load %arg8[%c0_10, %c0_11] : memref<8x1xf32, #tpu.memory_space<vmem>>, vector<8x1xf32>
    %29 = arith.mulf %27, %28 : vector<8x1xf32>
    %30 = vector.broadcast %25 : vector<8x1xf32> to vector<8x128xf32>
    %31 = arith.subf %21, %30 : vector<8x128xf32>
    %32 = math.exp %31 : vector<8x128xf32>
    %cst_12 = arith.constant dense<0.000000e+00> : vector<8xf32>
    %33 = vector.multi_reduction <add>, %32, %cst_12 [1] : vector<8x128xf32> to vector<8xf32>
    %34 = vector.shape_cast %33 : vector<8xf32> to vector<8x1xf32>
    %35 = arith.addf %29, %34 : vector<8x1xf32>
    %c0_13 = arith.constant 0 : index
    %c0_14 = arith.constant 0 : index
    %36 = vector.load %arg8[%c0_13, %c0_14] : memref<8x1xf32, #tpu.memory_space<vmem>>, vector<8x1xf32>
    tpu.vector_store %arg8[%c0_13, %c0_14], %35 {strides = array<i32>} : memref<8x1xf32, #tpu.memory_space<vmem>>, vector<8x1xf32>,
    %c0_15 = arith.constant 0 : index
    %c0_16 = arith.constant 0 : index
    %37 = vector.load %arg7[%c0_15, %c0_16] : memref<8x1xf32, #tpu.memory_space<vmem>>, vector<8x1xf32>
    tpu.vector_store %arg7[%c0_15, %c0_16], %25 {strides = array<i32>} : memref<8x1xf32, #tpu.memory_space<vmem>>, vector<8x1xf32>,
    %c0_i32_17 = arith.constant 0 : i32
    %38 = arith.cmpi eq, %arg1, %c0_i32_17 : i32
    %39 = arith.extui %38 : i1 to i32
    %c0_i32_18 = arith.constant 0 : i32
    %40 = arith.cmpi ne, %39, %c0_i32_18 : i32
    scf.if %40 {
      %c0_19 = arith.constant 0 : index
      %c0_20 = arith.constant 0 : index
      %41 = vector.load %arg7[%c0_19, %c0_20] : memref<8x1xf32, #tpu.memory_space<vmem>>, vector<8x1xf32>
      %c0_21 = arith.constant 0 : index
      %c0_22 = arith.constant 0 : index
      %42 = vector.load %arg8[%c0_21, %c0_22] : memref<8x1xf32, #tpu.memory_space<vmem>>, vector<8x1xf32>
      %43 = math.log %42 : vector<8x1xf32>
      %44 = arith.addf %41, %43 : vector<8x1xf32>
      %c0_23 = arith.constant 0 : index
      %c0_24 = arith.constant 0 : index
      %45 = vector.load %arg9[%c0_23, %c0_24] : memref<8x1xf32, #tpu.memory_space<vmem>>, vector<8x1xf32>
      %46 = arith.subf %44, %45 : vector<8x1xf32>
      %c0_25 = arith.constant 0 : index
      %c0_26 = arith.constant 0 : index
      %47 = vector.load %arg5[%c0_25, %c0_26] : memref<8x1xf32, #tpu.memory_space<vmem>>, vector<8x1xf32>
      tpu.vector_store %arg5[%c0_25, %c0_26], %46 {strides = array<i32>} : memref<8x1xf32, #tpu.memory_space<vmem>>, vector<8x1xf32>,
    } else {
    }
    return
  }
  func.func @transform_0(%arg0: i32, %arg1: i32) -> (i32, i32) {
    %c0_i32 = arith.constant 0 : i32
    %c0_i32_0 = arith.constant 0 : i32
    return %arg0, %c0_i32 : i32, i32
  }
  func.func @transform_1(%arg0: i32, %arg1: i32) -> (i32, i32) {
    %c0_i32 = arith.constant 0 : i32
    %c0_i32_0 = arith.constant 0 : i32
    return %arg0, %c0_i32 : i32, i32
  }
  func.func @transform_2(%arg0: i32, %arg1: i32) -> (i32, i32) {
    %c0_i32 = arith.constant 0 : i32
    %c0_i32_0 = arith.constant 0 : i32
    return %arg1, %c0_i32 : i32, i32
  }
  func.func @transform_3(%arg0: i32, %arg1: i32) -> (i32, i32) {
    %c0_i32 = arith.constant 0 : i32
    %c0_i32_0 = arith.constant 0 : i32
    return %arg0, %c0_i32 : i32, i32
  }
}

</mosaic_0001>

<bundles_post_ra>
// kernel: tpu_custom_call.1
= control target key start
LH: loop header
LB: loop body
LE: loop exit
PB: predicated region body
PF: predicated region fallthrough
CT: control target
= control target key end

     0   :  { %8 = vsyncpa [#allocation7], 0  ;;  %s630_s0 = inlined_call_operand.hbm [shape: f32[8,128], index: 0, kind: input, shape index: {}]   ;;  %s631_s1 = inlined_call_operand.hbm [shape: f32[8,128], index: 1, kind: input, shape index: {}]   ;;  %s632_s2 = inlined_call_operand.hbm [shape: f32[128,128], index: 2, kind: input, shape index: {}]   ;;  %s633_s3 = inlined_call_operand.vmem [shape: f32[8,1], index: 3, kind: output, shape index: {}]  }
   0x1   :  { %9 = vsyncpa [#allocation9], 0  ;;  %s476_s12 = smov [#allocation8]   ;;  %s477_s14 = smov [#allocation6]  }
   0x2   :  { %s26_s13 = sshll.u32 %s476_s12, 4  ;;  %s16_s15 = sshll.u32 %s477_s14, 4  ;;  %s27_s13 = int_to_ptr.vmem [resolvable:$true] %s26_s13  ;;  %s17_s15 = int_to_ptr.vmem [resolvable:$true] %s16_s15 }
   0x3   :  { %s420_s16 = scalar_lea.vmem %s27_s13, 128  ;;  %p425_p1 = scmp.lt.s32.totalorder %s27_s13, %s27_s13 }
   0x4   :  { %p421_p0 = scmp.ne.s32.totalorder %s27_s13, %s420_s16  ;;  %p426_p2 = scmp.lt.s32.totalorder %s420_s16, %s420_s16 }
   0x6   :  { %p427_p3 = por %p426_p2, %p425_p1 }
   0x8   :  { %p428_p4 = pnand %p427_p3, %p421_p0 }
   0xa   :  { %431 = shalt.err (!%p428_p4)
}
   0xb   :  { %29 = dma.hbm_to_vmem [thread:$0]  %s631_s1, 128, %s27_s13, [#allocation9]  }
   0xc   :  { %s440_s19 = scalar_lea.vmem %s17_s15, 128  ;;  %p445_p6 = scmp.lt.s32.totalorder %s17_s15, %s17_s15 }
   0xd   :  { %p441_p5 = scmp.ne.s32.totalorder %s17_s15, %s440_s19  ;;  %p446_p7 = scmp.lt.s32.totalorder %s440_s19, %s440_s19 }
   0xf   :  { %p447_p8 = por %p446_p7, %p445_p6 }
  0x11   :  { %p448_p9 = pnand %p447_p8, %p441_p5 }
  0x13   :  { %451 = shalt.err (!%p448_p9)
}
  0x14   :  { %19 = dma.hbm_to_vmem [thread:$0]  %s630_s0, 128, %s17_s15, [#allocation7]  }
  0x15   :  { %s478_s22 = smov [#allocation10]  }
  0x16   :  { %s35_s23 = sshll.u32 %s478_s22, 4  ;;  %s36_s23 = int_to_ptr.vmem [resolvable:$true] %s35_s23 }
  0x17   :  { %s460_s24 = scalar_lea.vmem %s36_s23, 2048  ;;  %p465_p11 = scmp.lt.s32.totalorder %s36_s23, %s36_s23 }
  0x18   :  { %p461_p10 = scmp.ne.s32.totalorder %s36_s23, %s460_s24  ;;  %p466_p12 = scmp.lt.s32.totalorder %s460_s24, %s460_s24 }
  0x1a   :  { %p467_p13 = por %p466_p12, %p465_p11 }
  0x1c   :  { %p468_p0 = pnand %p467_p13, %p461_p10 }
  0x1e   :  { %471 = shalt.err (!%p468_p0)
}
  0x1f   :  { %s479_s1 = smov 128   ;;  %s480_s25 = smov 8  }
  0x20   :  { %41 = dma.hbm_to_vmem [thread:$0]  %s632_s2, 2048, %s36_s23, [#allocation9], %s479_s1, %s479_s1, %s480_s25  }
  0x21   :  { %472 = dma.done.wait [#allocation7], 128  }
  0x22   :  { %473 = vsyncadd [#allocation7], 4294967168 }
  0x23   :  { %474 = dma.done.wait [#allocation9], 2176  }
  0x24   :  { %475 = vsyncadd [#allocation9], 4294965120  ;;  %v514_v0 = vld [vmem:[#allocation10 + $0x78] sm:$0xff]  ;;  %v516_v1 = vld [vmem:[#allocation10 + $0x70] sm:$0xff]  ;;  %v481_v30 = vmov 0.0   ;;  %vm482_vm0 = vmmov 0  }
  0x25   :  { %v518_v2 = vld [vmem:[#allocation10 + $0x68] sm:$0xff]  ;;  %v109_v3 = vmul.f32 %v514_v0, %v514_v0  ;;  %v524_v5 = vld [vmem:[#allocation10 + $0x60] sm:$0xff]  ;;  %v108_v6 = vmul.f32 %v516_v1, %v516_v1  ;;  %v530_v8 = vld [vmem:[#allocation10 + $0x58] sm:$0xff]  ;;  %325 = vmatprep.subr.mxu0 %v481_v30  ;;  %357 = vmatprep.mubr.msk.f32.mxu0 %vm482_vm0, %v481_v30  ;;  %vm74_vm1 = vcmask 7168  }
  0x26   :  { %v107_v4 = vmul.f32 %v518_v2, %v518_v2  ;;  %v106_v7 = vmul.f32 %v524_v5, %v524_v5  ;;  %v532_v9 = vld [vmem:[#allocation10 + $0x50] sm:$0xff]  ;;  %v105_v10 = vmul.f32 %v530_v8, %v530_v8  ;;  %v538_v12 = vld [vmem:[#allocation10 + $0x48] sm:$0xff]  ;;  %v540_v13 = vld [vmem:[#allocation10 + $0x40] sm:$0xff] }
  0x27   :  { %140 = vadd.xlane.f32.xlu0 %v109_v3  ;;  %v104_v11 = vmul.f32 %v532_v9, %v532_v9  ;;  %v103_v14 = vmul.f32 %v538_v12, %v538_v12  ;;  %v102_v15 = vmul.f32 %v540_v13, %v540_v13  ;;  %v546_v16 = vld [vmem:[#allocation10 + $0x38] sm:$0xff]  ;;  %v548_v17 = vld [vmem:[#allocation10 + $0x30] sm:$0xff]  ;;  %v554_v20 = vld [vmem:[#allocation10 + $0x28] sm:$0xff] }
  0x28   :  { %136 = vadd.xlane.f32.xlu1 %v107_v4  ;;  %v101_v18 = vmul.f32 %v546_v16, %v546_v16  ;;  %v100_v19 = vmul.f32 %v548_v17, %v548_v17  ;;  %v556_v21 = vld [vmem:[#allocation10 + $0x20] sm:$0xff]  ;;  %v99_v22 = vmul.f32 %v554_v20, %v554_v20  ;;  %v562_v24 = vld [vmem:[#allocation10 + $0x18] sm:$0xff]  ;;  %v564_v25 = vld [vmem:[#allocation10 + $0x10] sm:$0xff] }
  0x29   :  { %v98_v23 = vmul.f32 %v556_v21, %v556_v21  ;;  %v97_v26 = vmul.f32 %v562_v24, %v562_v24  ;;  %v96_v27 = vmul.f32 %v564_v25, %v564_v25  ;;  %v570_v28 = vld [vmem:[#allocation10 + $0x8] sm:$0xff]  ;;  %v572_v29 = vld [vmem:[#allocation10] sm:$0xff]  ;;  %v579_v33 = vld [vmem:[#allocation6] sm:$0xff] }
  0x2a   :  { %v95_v31 = vmul.f32 %v570_v28, %v570_v28  ;;  %v94_v32 = vmul.f32 %v572_v29, %v572_v29  ;;  %v581_v34 = vld [vmem:[#allocation8] sm:$0xff]  ;;  %v56_v35 = vmul.f32 %v579_v33, %v579_v33 }
  0x2b   :  { %138 = vadd.xlane.f32.xlu0 %v108_v6  ;;  %v64_v36 = vmul.f32 %v581_v34, %v581_v34 }
  0x2c   :  { %134 = vadd.xlane.f32.xlu1 %v106_v7 }
  0x2f   :  { %132 = vadd.xlane.f32.xlu0 %v105_v10 }
  0x30   :  { %130 = vadd.xlane.f32.xlu1 %v104_v11 }
  0x33   :  { %128 = vadd.xlane.f32.xlu0 %v103_v14 }
  0x34   :  { %126 = vadd.xlane.f32.xlu1 %v102_v15 }
  0x37   :  { %124 = vadd.xlane.f32.xlu0 %v101_v18 }
  0x38   :  { %122 = vadd.xlane.f32.xlu1 %v100_v19 }
  0x3b   :  { %120 = vadd.xlane.f32.xlu0 %v99_v22 }
  0x3c   :  { %118 = vadd.xlane.f32.xlu1 %v98_v23 }
  0x3f   :  { %116 = vadd.xlane.f32.xlu0 %v97_v26 }
  0x40   :  { %114 = vadd.xlane.f32.xlu1 %v96_v27 }
  0x43   :  { %112 = vadd.xlane.f32.xlu0 %v95_v31 }
  0x44   :  { %110 = vadd.xlane.f32.xlu1 %v94_v32 }
  0x47   :  { %57 = vadd.xlane.f32.xlu0 %v56_v35 }
  0x48   :  { %65 = vadd.xlane.f32.xlu1 %v64_v36 }
  0xb0   :  { %v141_v37 = vpop.xlane.xlu0 %140 }
  0xb1   :  { %v137_v38 = vpop.xlane.xlu1 %136  ;;  %v157_v39 = vmax.f32 %v141_v37, 1e-24 }
  0xb2   :  { %v155_v40 = vmax.f32 %v137_v38, 1e-24 }
  0xb3   :  { %370 = vrsqrt.f32 %v157_v39 }
  0xb4   :  { %v139_v41 = vpop.xlane.xlu0 %138  ;;  %372 = vrsqrt.f32 %v155_v40 }
  0xb5   :  { %v135_v42 = vpop.xlane.xlu1 %134  ;;  %v156_v43 = vmax.f32 %v139_v41, 1e-24 }
  0xb6   :  { %v154_v44 = vmax.f32 %v135_v42, 1e-24 }
  0xb7   :  { %374 = vrsqrt.f32 %v156_v43 }
  0xb8   :  { %v133_v45 = vpop.xlane.xlu0 %132  ;;  %376 = vrsqrt.f32 %v154_v44 }
  0xb9   :  { %v131_v46 = vpop.xlane.xlu1 %130  ;;  %v153_v47 = vmax.f32 %v133_v45, 1e-24 }
  0xba   :  { %v152_v50 = vmax.f32 %v131_v46, 1e-24 }
  0xbb   :  { %378 = vrsqrt.f32 %v153_v47 }
  0xbc   :  { %v129_v48 = vpop.xlane.xlu0 %128  ;;  %380 = vrsqrt.f32 %v152_v50 }
  0xbd   :  { %v127_v49 = vpop.xlane.xlu1 %126  ;;  %v151_v56 = vmax.f32 %v129_v48, 1e-24 }
  0xbe   :  { %v150_v62 = vmax.f32 %v127_v49, 1e-24 }
  0xbf   :  { %382 = vrsqrt.f32 %v151_v56 }
  0xc0   :  { %v371_v51 = vpop.eup %370  ;;  %v125_v52 = vpop.xlane.xlu0 %124  ;;  %384 = vrsqrt.f32 %v150_v62 }
  0xc1   :  { %v123_v53 = vpop.xlane.xlu1 %122  ;;  %v189_v54 = vmul.f32 %v371_v51, %v514_v0  ;;  %v373_v55 = vpop.eup %372  ;;  %v149_v6 = vmax.f32 %v125_v52, 1e-24 }
  0xc2   :  { %v187_v61 = vmul.f32 %v373_v55, %v518_v2  ;;  %v148_v11 = vmax.f32 %v123_v53, 1e-24  ;;  %v483_v55 = vmov 0  }
  0xc3   :  { %326 = vmatpush3.xpose.msra.mxu0 %v189_v54  ;;  %386 = vrsqrt.f32 %v149_v6  ;;  %369 = vset.pattern.permute.xlu0 %v483_v55 }
  0xc4   :  { %v375_v57 = vpop.eup %374  ;;  %327 = vmatprep.subr.mxu0 %v481_v30  ;;  %v121_v58 = vpop.xlane.xlu0 %120  ;;  %388 = vrsqrt.f32 %v148_v11 }
  0xc5   :  { %v119_v59 = vpop.xlane.xlu1 %118  ;;  %v188_v60 = vmul.f32 %v375_v57, %v516_v1  ;;  %v377_v63 = vpop.eup %376  ;;  %v147_v23 = vmax.f32 %v121_v58, 1e-24 }
  0xc6   :  { %v186_v4 = vmul.f32 %v377_v63, %v524_v5  ;;  %v146_v27 = vmax.f32 %v119_v59, 1e-24 }
  0xc7   :  { %328 = vmatpush3.xpose.msra.mxu0 %v188_v60 }
  0xc8   :  { %329 = vmatprep.subr.mxu0 %v481_v30  ;;  %v117_v0 = vpop.xlane.xlu0 %116  ;;  %v379_v7 = vpop.eup %378 }
  0xc9   :  { %v115_v3 = vpop.xlane.xlu1 %114  ;;  %v185_v2 = vmul.f32 %v379_v7, %v530_v8  ;;  %v381_v14 = vpop.eup %380  ;;  %v145_v35 = vmax.f32 %v117_v0, 1e-24 }
  0xca   :  { %v184_v5 = vmul.f32 %v381_v14, %v532_v9  ;;  %v144_v38 = vmax.f32 %v115_v3, 1e-24 }
  0xcb   :  { %330 = vmatpush3.xpose.msra.mxu0 %v187_v61 }
  0xcc   :  { %331 = vmatprep.subr.mxu0 %v481_v30  ;;  %v113_v10 = vpop.xlane.xlu0 %112  ;;  %v383_v26 = vpop.eup %382 }
  0xcd   :  { %v111_v1 = vpop.xlane.xlu1 %110  ;;  %v183_v8 = vmul.f32 %v383_v26, %v538_v12  ;;  %v385_v31 = vpop.eup %384  ;;  %v143_v42 = vmax.f32 %v113_v10, 1e-24 }
  0xce   :  { %v182_v32 = vmul.f32 %v385_v31, %v540_v13  ;;  %v142_v46 = vmax.f32 %v111_v1, 1e-24 }
  0xcf   :  { %332 = vmatpush3.xpose.msra.mxu0 %v186_v4 }
  0xd0   :  { %333 = vmatprep.subr.mxu0 %v481_v30  ;;  %v58_v15 = vpop.xlane.xlu0 %57  ;;  %v387_v9 = vpop.eup %386 }
  0xd1   :  { %v66_v18 = vpop.xlane.xlu1 %65  ;;  %v59_v19 = vmax.f32 %v58_v15, 1e-24  ;;  %v389_v36 = vpop.eup %388  ;;  %v181_v37 = vmul.f32 %v387_v9, %v546_v16 }
  0xd2   :  { %v67_v22 = vmax.f32 %v66_v18, 1e-24  ;;  %v180_v13 = vmul.f32 %v389_v36, %v548_v17 }
  0xd3   :  { %334 = vmatpush3.xpose.msra.mxu0 %v185_v2  ;;  %390 = vrsqrt.f32 %v59_v19 }
  0xd4   :  { %335 = vmatprep.subr.mxu0 %v481_v30  ;;  %392 = vrsqrt.f32 %v67_v22 }
  0xd5   :  { %394 = vrsqrt.f32 %v147_v23 }
  0xd6   :  { %396 = vrsqrt.f32 %v146_v27 }
  0xd7   :  { %336 = vmatpush3.xpose.msra.mxu0 %v184_v5  ;;  %398 = vrsqrt.f32 %v145_v35 }
  0xd8   :  { %337 = vmatprep.subr.mxu0 %v481_v30  ;;  %400 = vrsqrt.f32 %v144_v38 }
  0xd9   :  { %402 = vrsqrt.f32 %v143_v42 }
  0xda   :  { %404 = vrsqrt.f32 %v142_v46 }
  0xdb   :  { %338 = vmatpush3.xpose.msra.mxu0 %v183_v8 }
  0xdc   :  { %339 = vmatprep.subr.mxu0 %v481_v30 }
  0xdf   :  { %340 = vmatpush3.xpose.msra.mxu0 %v182_v32 }
  0xe0   :  { %v391_v39 = vpop.eup %390  ;;  %341 = vmatprep.subr.mxu0 %v481_v30 }
  0xe1   :  { %v393_v12 = vpop.eup %392  ;;  %v61_v40 = vmul.f32 %v391_v39, %v579_v33 }
  0xe2   :  { %v69_v41 = vmul.f32 %v393_v12, %v581_v34  ;;  %v395_v44 = vpop.eup %394 }
  0xe3   :  { %342 = vmatpush3.xpose.msra.mxu0 %v181_v37  ;;  %v62_v43 = vmul.f32 10.0, %v61_v40  ;;  %v179_v16 = vmul.f32 %v395_v44, %v554_v20  ;;  %v397_v47 = vpop.eup %396 }
  0xe4   :  { %343 = vmatprep.subr.mxu0 %v481_v30  ;;  %v178_v33 = vmul.f32 %v397_v47, %v556_v21  ;;  %v399_v17 = vpop.eup %398 }
  0xe5   :  { %v70_v45 = vmul.f32 %v69_v41, %v62_v43  ;;  %v177_v34 = vmul.f32 %v399_v17, %v562_v24  ;;  %v401_v48 = vpop.eup %400 }
  0xe6   :  { %v176_v20 = vmul.f32 %v401_v48, %v564_v25  ;;  %v403_v49 = vpop.eup %402  ;;  %v261_v25 = vlaneseq }
  0xe7   :  { %344 = vmatpush3.xpose.msra.mxu0 %v180_v13  ;;  %71 = vadd.xlane.f32.xlu0 %v70_v45  ;;  %v175_v50 = vmul.f32 %v403_v49, %v570_v28  ;;  %v405_v51 = vpop.eup %404 }
  0xe8   :  { %345 = vmatprep.subr.mxu0 %v481_v30  ;;  %v174_v21 = vmul.f32 %v405_v51, %v572_v29  ;;  %v262_v52 = vand.u32 127, %v261_v25  ;;  %v484_v29 = vmov 1.0  }
  0xe9   :  { %77 = vst.msk [vmem:[#allocation4] sm:$0xff] %vm74_vm1, %v484_v29 }
  0xea   :  { %vm266_vm2 = vcmp.lt.s32.totalorder %v262_v52, 16 }
  0xeb   :  { %346 = vmatpush3.xpose.msra.mxu0 %v179_v16 }
  0xec   :  { %347 = vmatprep.subr.mxu0 %v481_v30 }
  0xef   :  { %348 = vmatpush3.xpose.msra.mxu0 %v178_v33 }
  0xf0   :  { %349 = vmatprep.subr.mxu0 %v481_v30  ;;  %v275_v3 = vld [vmem:[#allocation4] sm:$0xff] }
  0xf3   :  { %350 = vmatpush3.xpose.msra.mxu0 %v177_v34 }
  0xf4   :  { %351 = vmatprep.subr.mxu0 %v481_v30 }
  0xf7   :  { %352 = vmatpush3.xpose.msra.mxu0 %v176_v20 }
  0xf8   :  { %353 = vmatprep.subr.mxu0 %v481_v30 }
  0xfb   :  { %354 = vmatpush3.xpose.msra.mxu0 %v175_v50 }
  0xfc   :  { %355 = vmatprep.subr.mxu0 %v481_v30 }
  0xff   :  { %356 = vmatpush3.xpose.msra.mxu0 %v174_v21 }
 0x102   :  { %358 = vmatmul.mubr.f32.vlgmr.msra.gmra.mxu0 %v62_v43 }
 0x170   :  { %v72_v24 = vpop.xlane.xlu0 %71 }
 0x171   :  { %75 = vst.msk [vmem:[#allocation5] sm:$0xff] %vm74_vm1, %v72_v24  ;;  %76 = vst.msk [vmem:[#allocation3] sm:$0xff] %vm74_vm1, %v72_v24 }
 0x178   :  { %v268_v56 = vld [vmem:[#allocation3] sm:$0xff]  ;;  %v299_v15 = vld [vmem:[#allocation5] sm:$0xff] }
 0x1c2   :  { %v257_v28 = vpop.f32.mrf.mxu0 }
 0x1c3   :  { %v267_v53 = vsel %vm266_vm2, %v257_v28, -inf }
 0x1c4   :  { %269 = vmax.xlane.f32.xlu1 %v267_v53  ;;  %v359_v54 = vpop.f32.mrf.mxu0 }
 0x24d   :  { %v270_v30 = vpop.xlane.xlu1 %269 }
 0x24e   :  { %v271_v57 = vmax.f32 %v268_v56, %v270_v30 }
 0x250   :  { %v272_v58 = vsub.f32 %v268_v56, %v271_v57  ;;  %290 = vst.msk [vmem:[#allocation3] sm:$0xff] %vm74_vm1, %v271_v57  ;;  %279 = vperm.xlu0 %369, %v271_v57  }
 0x252   :  { %v273_v63 = vmul.f32 1.442695, %v272_v58 }
 0x257   :  { %v294_v2 = vld [vmem:[#allocation3] sm:$0xff] }
 0x2cb   :  { %v280_v59 = vpop.permute.xlu0 %279 }
 0x2cc   :  { %v282_v60 = vsub.f32 %v267_v53, %v280_v59 }
 0x2ce   :  { %v283_v61 = vmul.f32 1.442695, %v282_v60 }
 0x2d0   :  { %406 = vpow2.f32 %v283_v61 }
 0x2d1   :  { %408 = vpow2.f32 %v273_v63 }
 0x2dd   :  { %v407_v62 = vpop.eup %406 }
 0x2de   :  { %285 = vadd.xlane.f32.xlu1 %v407_v62  ;;  %v409_v0 = vpop.eup %408 }
 0x2df   :  { %v276_v4 = vmul.f32 %v409_v0, %v275_v3 }
 0x367   :  { %v286_v6 = vpop.xlane.xlu1 %285 }
 0x368   :  { %v287_v7 = vadd.f32 %v286_v6, %v276_v4 }
 0x36a   :  { %289 = vst.msk [vmem:[#allocation4] sm:$0xff] %vm74_vm1, %v287_v7 }
 0x371   :  { %v295_v10 = vld [vmem:[#allocation4] sm:$0xff] }
 0x372   :  { %410 = vlog2.f32 %v295_v10 }
 0x37f   :  { %v411_v1 = vpop.eup %410 }
 0x380   :  { %v297_v11 = vmul.f32 0.6931472, %v411_v1 }
 0x382   :  { %v298_v14 = vadd.f32 %v297_v11, %v294_v2 }
 0x384   :  { %v300_v18 = vsub.f32 %v298_v14, %v299_v15 }
 0x386   :  { %301 = vst.msk [vmem:[%s633_s3] sm:$0xff] %vm74_vm1, %v300_v18 }
 0x387   :  { %306 = vsyncpa [#allocation7], 1 }
 0x388   :  { %307 = vsyncpa [#allocation9], 1 }

</bundles_post_ra>
